<compile_context>
chip_gen: v7x
topology: tpu7x:2x2x1
jax: 0.10.0
libtpu: 0.0.40
codegen_flags: <defaults>
</compile_context>

<pallas_src>
import functools

import jax
import jax.numpy as jnp
from jax import lax
from jax.experimental import pallas as pl
from jax.experimental.pallas import tpu as pltpu


def _elu(x):
    # PyTorch nn.ELU (alpha=1.0): x if x > 0 else expm1(x).
    # exp input is clamped to <= 0 (positive branch is discarded anyway, avoids
    # spurious inf), and a 5th-order series replaces exp(x)-1 for |x| < 0.25 to
    # kill the cancellation near zero.  EUP does the exp; the polynomial is VPU
    # filler in a DMA/MXU-bound kernel.
    xn = jnp.minimum(x, 0.0)
    em1 = jnp.exp(xn) - 1.0
    series = xn * (1.0 + xn * (0.5 + xn * (1.0 / 6.0
                                           + xn * (1.0 / 24.0 + xn * (1.0 / 120.0)))))
    em1 = jnp.where(xn > -0.25, series, em1)
    return jnp.where(x > 0.0, x, em1)


def _value_nn_kernel(x_ref, w1T_ref, b1_ref, w2T_ref, b2_ref, w3T_ref, b3_ref,
                     o_ref, *, matmul_dtype):
    md = matmul_dtype
    x = x_ref[...].astype(md)                                  # (bt, in) natural layout
    # Layer 1: contract on x's last dim (trans_b form) -> (hid, bt); batch lands
    # on the 128-lane axis, so bias/ELU below are lane-dense.
    h1 = lax.dot_general(w1T_ref[...].astype(md), x,
                         (((1,), (1,)), ((), ())),
                         preferred_element_type=jnp.float32)
    h1 = _elu(h1 + b1_ref[...])                                # b1: (hid,1) broadcast over lanes
    # Layer 2
    h2 = jnp.dot(w2T_ref[...].astype(md), h1.astype(md),
                 preferred_element_type=jnp.float32)
    h2 = _elu(h2 + b2_ref[...])
    # Layer 3 (no activation): (out, bt) feature-major, then a small XLU
    # transpose so the store is natural (bt, out) and no post-kernel HBM
    # transpose pass is needed.
    outT = jnp.dot(w3T_ref[...].astype(md), h2.astype(md),
                   preferred_element_type=jnp.float32)
    outT = outT + b3_ref[...]                                  # b3: (out,1)
    o_ref[...] = outT.T.astype(o_ref.dtype)


def value_nn_forward(x, params, *, batch_tile=8192, matmul_dtype=jnp.bfloat16):
    """x: (B, input_size).  params: w1 (in,hid), b1 (1,hid), w2 (hid,hid),
    b2 (1,hid), w3 (hid,out), b3 (1,out).  Returns (B, output_size) in x.dtype.
    matmul_dtype=jnp.bfloat16 feeds the MXU bf16 operands with f32 accumulation
    (~1e-3 relative error); pass jnp.float32 for bit-tight results."""
    w1, b1 = params["w1"], params["b1"]
    w2, b2 = params["w2"], params["b2"]
    w3, b3 = params["w3"], params["b3"]
    B, in_sz = x.shape
    hid = w1.shape[1]
    out_sz = w3.shape[1]

    # Batch tile: multiple of 128 (lane-dense), big enough to amortize the
    # ~0.35us/step grid overhead, but never collapsing the grid below 2 steps
    # when B spans >= 2 tiles (so both v7x TensorCores get work under
    # dimension_semantics=("parallel",)).  Sweep batch_tile in 4096..16384;
    # per-step live VMEM is only a few hundred bytes per batch row, so the
    # default fits even v5e's 16 MiB scoped limit with room to spare.
    tiles_needed = -(-B // 128)
    tiles_wanted = max(1, batch_tile // 128)
    if tiles_needed >= 2:
        tiles_per_step = min(tiles_wanted, -(-tiles_needed // 2))
    else:
        tiles_per_step = 1
    bt = 128 * tiles_per_step
    n_steps = -(-B // bt)   # ragged tail: Pallas masks the partial last block

    kernel = functools.partial(_value_nn_kernel, matmul_dtype=matmul_dtype)

    out = pl.pallas_call(
        kernel,
        out_shape=jax.ShapeDtypeStruct((B, out_sz), x.dtype),
        grid_spec=pltpu.PrefetchScalarGridSpec(
            num_scalar_prefetch=0,
            grid=(n_steps,),
            in_specs=[
                pl.BlockSpec((bt, in_sz), lambda i: (i, 0)),     # x, natural layout, streamed
                pl.BlockSpec((hid, in_sz), lambda i: (0, 0)),    # w1^T (constant -> VMEM resident)
                pl.BlockSpec((hid, 1), lambda i: (0, 0)),        # b1^T
                pl.BlockSpec((hid, hid), lambda i: (0, 0)),      # w2^T
                pl.BlockSpec((hid, 1), lambda i: (0, 0)),        # b2^T
                pl.BlockSpec((out_sz, hid), lambda i: (0, 0)),   # w3^T
                pl.BlockSpec((out_sz, 1), lambda i: (0, 0)),     # b3^T
            ],
            out_specs=pl.BlockSpec((bt, out_sz), lambda i: (i, 0)),  # natural (bt, out) store
        ),
        compiler_params=pltpu.CompilerParams(
            dimension_semantics=("parallel",),
            vmem_limit_bytes=32 * 1024 * 1024,
        ),
    )(x, w1.T, b1.T, w2.T, b2.T, w3.T, b3.T)   # weight/bias transposes are tiny (<10 KB)
    return out


def init_params(key, input_size, hidden_size, output_size):
    """Deterministic init mimicking nn.Linear's uniform(-1/sqrt(fan_in), 1/sqrt(fan_in))."""
    ks = jax.random.split(key, 6)

    def linear(kw, kb, fan_in, fan_out):
        bound = 1.0 / jnp.sqrt(jnp.float32(fan_in))
        w = jax.random.uniform(kw, (fan_in, fan_out), jnp.float32, -bound, bound)
        b = jax.random.uniform(kb, (1, fan_out), jnp.float32, -bound, bound)
        return w, b

    w1, b1 = linear(ks[0], ks[1], input_size, hidden_size)
    w2, b2 = linear(ks[2], ks[3], hidden_size, hidden_size)
    w3, b3 = linear(ks[4], ks[5], hidden_size, output_size)
    return {"w1": w1, "b1": b1, "w2": w2, "b2": b2, "w3": w3, "b3": b3}


def _elu_ref(x):
    return jnp.where(x > 0, x, jnp.expm1(x))


def value_nn_ref(x, p):
    """Pure-JAX reference for correctness check."""
    h = _elu_ref(x @ p["w1"] + p["b1"])
    h = _elu_ref(h @ p["w2"] + p["b2"])
    return h @ p["w3"] + p["b3"]


if __name__ == "__main__":
    input_size, hidden_size, output_size = 16, 32, 8

    key = jax.random.PRNGKey(0)
    kx, kx2, kp = jax.random.split(key, 3)
    params = init_params(kp, input_size, hidden_size, output_size)

    # Case 1: batch=256 -> bt=128, grid of 2 "parallel" steps; f32 matmuls for a
    # tight structural check against the pure-JAX reference.
    batch = 256
    x = jax.random.normal(kx, (batch, input_size), jnp.float32)
    ref = value_nn_ref(x, params)
    out_f32 = jax.block_until_ready(
        value_nn_forward(x, params, matmul_dtype=jnp.float32))
    assert out_f32.shape == (batch, output_size)
    assert jnp.allclose(out_f32, ref, atol=1e-5, rtol=1e-5), "mismatch (f32 matmul path)"

    # Case 2: default bf16 MXU operands (f32 accumulation) -> ~1e-3 relative.
    out_bf16 = jax.block_until_ready(value_nn_forward(x, params))
    assert out_bf16.shape == (batch, output_size)
    assert jnp.allclose(out_bf16, ref, atol=3e-2, rtol=3e-2), "mismatch (bf16 matmul path)"

    # Case 3: ragged batch exercises the un-padded partial last block
    # (grid = cdiv(B, bt); Pallas masks the tail writeback, no jnp.pad pass).
    batch2 = 50
    x2 = jax.random.normal(kx2, (batch2, input_size), jnp.float32)
    out2 = jax.block_until_ready(value_nn_forward(x2, params))
    ref2 = value_nn_ref(x2, params)
    assert out2.shape == (batch2, output_size)
    assert jnp.allclose(out2, ref2, atol=3e-2, rtol=3e-2), "mismatch (ragged batch)"

    print("KERNEL_OK")
</pallas_src>

<mosaic_0001>
module attributes {stable_mosaic.version = 11 : i64} {
  func.func @_value_nn_kernel(%arg0: i32, %arg1: memref<128x16xf32, #tpu.memory_space<vmem>>, %arg2: memref<32x16xf32, #tpu.memory_space<vmem>>, %arg3: memref<32x1xf32, #tpu.memory_space<vmem>>, %arg4: memref<32x32xf32, #tpu.memory_space<vmem>>, %arg5: memref<32x1xf32, #tpu.memory_space<vmem>>, %arg6: memref<8x32xf32, #tpu.memory_space<vmem>>, %arg7: memref<8x1xf32, #tpu.memory_space<vmem>>, %arg8: memref<128x8xf32, #tpu.memory_space<vmem>>) attributes {dimension_semantics = [#tpu.dimension_semantics<parallel>], iteration_bounds = array<i64: 2>, scalar_prefetch = 0 : i64, scratch_operands = 0 : i64, tpu.core_type = #tpu.core_type<tc>, window_params = [{transform_indices = @transform_0, window_bounds = array<i64: 128, 16>}, {pipeline_mode = #tpu.pipeline_mode<synchronous>, transform_indices = @transform_1, window_bounds = array<i64: 32, 16>}, {pipeline_mode = #tpu.pipeline_mode<synchronous>, transform_indices = @transform_2, window_bounds = array<i64: 32, 1>}, {pipeline_mode = #tpu.pipeline_mode<synchronous>, transform_indices = @transform_3, window_bounds = array<i64: 32, 32>}, {pipeline_mode = #tpu.pipeline_mode<synchronous>, transform_indices = @transform_4, window_bounds = array<i64: 32, 1>}, {pipeline_mode = #tpu.pipeline_mode<synchronous>, transform_indices = @transform_5, window_bounds = array<i64: 8, 32>}, {pipeline_mode = #tpu.pipeline_mode<synchronous>, transform_indices = @transform_6, window_bounds = array<i64: 8, 1>}, {transform_indices = @transform_7, window_bounds = array<i64: 128, 8>}]} {
    %c0 = arith.constant 0 : index
    %c0_0 = arith.constant 0 : index
    %0 = vector.load %arg1[%c0, %c0_0] : memref<128x16xf32, #tpu.memory_space<vmem>>, vector<128x16xf32>
    %c0_1 = arith.constant 0 : index
    %c0_2 = arith.constant 0 : index
    %1 = vector.load %arg2[%c0_1, %c0_2] : memref<32x16xf32, #tpu.memory_space<vmem>>, vector<32x16xf32>
    %cst = arith.constant dense<0.000000e+00> : vector<32x128xf32>
    %2 = tpu.matmul %1, %0, %cst {dimension_numbers = #tpu.dot_dimension_numbers<[1], [1], [0], [0], [0, 0, 1, 0], [], []>} : vector<32x16xf32>, vector<128x16xf32>, vector<32x128xf32> -> vector<32x128xf32>
    %c0_3 = arith.constant 0 : index
    %c0_4 = arith.constant 0 : index
    %3 = vector.load %arg3[%c0_3, %c0_4] : memref<32x1xf32, #tpu.memory_space<vmem>>, vector<32x1xf32>
    %4 = vector.broadcast %3 : vector<32x1xf32> to vector<32x128xf32>
    %5 = arith.addf %2, %4 : vector<32x128xf32>
    %cst_5 = arith.constant 0.000000e+00 : f32
    %6 = vector.broadcast %cst_5 : f32 to vector<32x128xf32>
    %7 = arith.minimumf %5, %6 : vector<32x128xf32>
    %8 = math.exp %7 : vector<32x128xf32>
    %cst_6 = arith.constant 1.000000e+00 : f32
    %9 = vector.broadcast %cst_6 : f32 to vector<32x128xf32>
    %10 = arith.subf %8, %9 : vector<32x128xf32>
    %cst_7 = arith.constant 0.00833333377 : f32
    %11 = vector.broadcast %cst_7 : f32 to vector<32x128xf32>
    %12 = arith.mulf %7, %11 : vector<32x128xf32>
    %cst_8 = arith.constant 0.0416666679 : f32
    %13 = vector.broadcast %cst_8 : f32 to vector<32x128xf32>
    %14 = arith.addf %13, %12 : vector<32x128xf32>
    %15 = arith.mulf %7, %14 : vector<32x128xf32>
    %cst_9 = arith.constant 0.166666672 : f32
    %16 = vector.broadcast %cst_9 : f32 to vector<32x128xf32>
    %17 = arith.addf %16, %15 : vector<32x128xf32>
    %18 = arith.mulf %7, %17 : vector<32x128xf32>
    %cst_10 = arith.constant 5.000000e-01 : f32
    %19 = vector.broadcast %cst_10 : f32 to vector<32x128xf32>
    %20 = arith.addf %19, %18 : vector<32x128xf32>
    %21 = arith.mulf %7, %20 : vector<32x128xf32>
    %cst_11 = arith.constant 1.000000e+00 : f32
    %22 = vector.broadcast %cst_11 : f32 to vector<32x128xf32>
    %23 = arith.addf %22, %21 : vector<32x128xf32>
    %24 = arith.mulf %7, %23 : vector<32x128xf32>
    %cst_12 = arith.constant -2.500000e-01 : f32
    %25 = vector.broadcast %cst_12 : f32 to vector<32x128xf32>
    %26 = arith.cmpf ogt, %7, %25 : vector<32x128xf32>
    %27 = arith.select %26, %24, %10 : vector<32x128xi1>, vector<32x128xf32>
    %cst_13 = arith.constant 0.000000e+00 : f32
    %28 = vector.broadcast %cst_13 : f32 to vector<32x128xf32>
    %29 = arith.cmpf ogt, %5, %28 : vector<32x128xf32>
    %30 = arith.select %29, %5, %27 : vector<32x128xi1>, vector<32x128xf32>
    %c0_14 = arith.constant 0 : index
    %c0_15 = arith.constant 0 : index
    %31 = vector.load %arg4[%c0_14, %c0_15] : memref<32x32xf32, #tpu.memory_space<vmem>>, vector<32x32xf32>
    %cst_16 = arith.constant dense<0.000000e+00> : vector<32x128xf32>
    %32 = tpu.matmul %31, %30, %cst_16 {dimension_numbers = #tpu.dot_dimension_numbers<[1], [0], [0], [1], [0, 0, 1, 1], [], []>} : vector<32x32xf32>, vector<32x128xf32>, vector<32x128xf32> -> vector<32x128xf32>
    %c0_17 = arith.constant 0 : index
    %c0_18 = arith.constant 0 : index
    %33 = vector.load %arg5[%c0_17, %c0_18] : memref<32x1xf32, #tpu.memory_space<vmem>>, vector<32x1xf32>
    %34 = vector.broadcast %33 : vector<32x1xf32> to vector<32x128xf32>
    %35 = arith.addf %32, %34 : vector<32x128xf32>
    %cst_19 = arith.constant 0.000000e+00 : f32
    %36 = vector.broadcast %cst_19 : f32 to vector<32x128xf32>
    %37 = arith.minimumf %35, %36 : vector<32x128xf32>
    %38 = math.exp %37 : vector<32x128xf32>
    %cst_20 = arith.constant 1.000000e+00 : f32
    %39 = vector.broadcast %cst_20 : f32 to vector<32x128xf32>
    %40 = arith.subf %38, %39 : vector<32x128xf32>
    %cst_21 = arith.constant 0.00833333377 : f32
    %41 = vector.broadcast %cst_21 : f32 to vector<32x128xf32>
    %42 = arith.mulf %37, %41 : vector<32x128xf32>
    %cst_22 = arith.constant 0.0416666679 : f32
    %43 = vector.broadcast %cst_22 : f32 to vector<32x128xf32>
    %44 = arith.addf %43, %42 : vector<32x128xf32>
    %45 = arith.mulf %37, %44 : vector<32x128xf32>
    %cst_23 = arith.constant 0.166666672 : f32
    %46 = vector.broadcast %cst_23 : f32 to vector<32x128xf32>
    %47 = arith.addf %46, %45 : vector<32x128xf32>
    %48 = arith.mulf %37, %47 : vector<32x128xf32>
    %cst_24 = arith.constant 5.000000e-01 : f32
    %49 = vector.broadcast %cst_24 : f32 to vector<32x128xf32>
    %50 = arith.addf %49, %48 : vector<32x128xf32>
    %51 = arith.mulf %37, %50 : vector<32x128xf32>
    %cst_25 = arith.constant 1.000000e+00 : f32
    %52 = vector.broadcast %cst_25 : f32 to vector<32x128xf32>
    %53 = arith.addf %52, %51 : vector<32x128xf32>
    %54 = arith.mulf %37, %53 : vector<32x128xf32>
    %cst_26 = arith.constant -2.500000e-01 : f32
    %55 = vector.broadcast %cst_26 : f32 to vector<32x128xf32>
    %56 = arith.cmpf ogt, %37, %55 : vector<32x128xf32>
    %57 = arith.select %56, %54, %40 : vector<32x128xi1>, vector<32x128xf32>
    %cst_27 = arith.constant 0.000000e+00 : f32
    %58 = vector.broadcast %cst_27 : f32 to vector<32x128xf32>
    %59 = arith.cmpf ogt, %35, %58 : vector<32x128xf32>
    %60 = arith.select %59, %35, %57 : vector<32x128xi1>, vector<32x128xf32>
    %c0_28 = arith.constant 0 : index
    %c0_29 = arith.constant 0 : index
    %61 = vector.load %arg6[%c0_28, %c0_29] : memref<8x32xf32, #tpu.memory_space<vmem>>, vector<8x32xf32>
    %cst_30 = arith.constant dense<0.000000e+00> : vector<8x128xf32>
    %62 = tpu.matmul %61, %60, %cst_30 {dimension_numbers = #tpu.dot_dimension_numbers<[1], [0], [0], [1], [0, 0, 1, 1], [], []>} : vector<8x32xf32>, vector<32x128xf32>, vector<8x128xf32> -> vector<8x128xf32>
    %c0_31 = arith.constant 0 : index
    %c0_32 = arith.constant 0 : index
    %63 = vector.load %arg7[%c0_31, %c0_32] : memref<8x1xf32, #tpu.memory_space<vmem>>, vector<8x1xf32>
    %64 = vector.broadcast %63 : vector<8x1xf32> to vector<8x128xf32>
    %65 = arith.addf %62, %64 : vector<8x128xf32>
    %66 = tpu.transpose %65, [1, 0] : vector<8x128xf32> -> vector<128x8xf32>
    %c0_33 = arith.constant 0 : index
    %c0_34 = arith.constant 0 : index
    %67 = vector.load %arg8[%c0_33, %c0_34] : memref<128x8xf32, #tpu.memory_space<vmem>>, vector<128x8xf32>
    tpu.vector_store %arg8[%c0_33, %c0_34], %66 {strides = array<i32>} : memref<128x8xf32, #tpu.memory_space<vmem>>, vector<128x8xf32>,
    return
  }
  func.func @transform_0(%arg0: i32) -> (i32, i32) {
    %c0_i32 = arith.constant 0 : i32
    %c0_i32_0 = arith.constant 0 : i32
    return %arg0, %c0_i32 : i32, i32
  }
  func.func @transform_1(%arg0: i32) -> (i32, i32) {
    %c0_i32 = arith.constant 0 : i32
    %c0_i32_0 = arith.constant 0 : i32
    %c0_i32_1 = arith.constant 0 : i32
    return %c0_i32, %c0_i32_0 : i32, i32
  }
  func.func @transform_2(%arg0: i32) -> (i32, i32) {
    %c0_i32 = arith.constant 0 : i32
    %c0_i32_0 = arith.constant 0 : i32
    %c0_i32_1 = arith.constant 0 : i32
    return %c0_i32, %c0_i32_0 : i32, i32
  }
  func.func @transform_3(%arg0: i32) -> (i32, i32) {
    %c0_i32 = arith.constant 0 : i32
    %c0_i32_0 = arith.constant 0 : i32
    %c0_i32_1 = arith.constant 0 : i32
    return %c0_i32, %c0_i32_0 : i32, i32
  }
  func.func @transform_4(%arg0: i32) -> (i32, i32) {
    %c0_i32 = arith.constant 0 : i32
    %c0_i32_0 = arith.constant 0 : i32
    %c0_i32_1 = arith.constant 0 : i32
    return %c0_i32, %c0_i32_0 : i32, i32
  }
  func.func @transform_5(%arg0: i32) -> (i32, i32) {
    %c0_i32 = arith.constant 0 : i32
    %c0_i32_0 = arith.constant 0 : i32
    %c0_i32_1 = arith.constant 0 : i32
    return %c0_i32, %c0_i32_0 : i32, i32
  }
  func.func @transform_6(%arg0: i32) -> (i32, i32) {
    %c0_i32 = arith.constant 0 : i32
    %c0_i32_0 = arith.constant 0 : i32
    %c0_i32_1 = arith.constant 0 : i32
    return %c0_i32, %c0_i32_0 : i32, i32
  }
  func.func @transform_7(%arg0: i32) -> (i32, i32) {
    %c0_i32 = arith.constant 0 : i32
    %c0_i32_0 = arith.constant 0 : i32
    return %arg0, %c0_i32 : i32, i32
  }
}

</mosaic_0001>

<bundles_post_ra>
// kernel: tpu_custom_call.1
= control target key start
LH: loop header
LB: loop body
LE: loop exit
PB: predicated region body
PF: predicated region fallthrough
CT: control target
= control target key end

     0   :  { %s1203_s24 = smov 0   ;;  %s1440_s0 = inlined_call_operand.vmem [shape: f32[256,16], index: 0, kind: input, shape index: {}]   ;;  %s1441_s1 = inlined_call_operand.vmem [shape: f32[32,16], index: 1, kind: input, shape index: {}]   ;;  %s1442_s2 = inlined_call_operand.vmem [shape: f32[32,1], index: 2, kind: input, shape index: {}]   ;;  %s1443_s3 = inlined_call_operand.vmem [shape: f32[32,32], index: 3, kind: input, shape index: {}]   ;;  %s1444_s4 = inlined_call_operand.vmem [shape: f32[32,1], index: 4, kind: input, shape index: {}]   ;;  %s1445_s5 = inlined_call_operand.vmem [shape: f32[8,32], index: 5, kind: input, shape index: {}]   ;;  %s1446_s6 = inlined_call_operand.vmem [shape: f32[8,1], index: 6, kind: input, shape index: {}]   ;;  %s1447_s7 = inlined_call_operand.vmem [shape: f32[256,8], index: 7, kind: output, shape index: {}]  }
   0x1 LB: > { %s919_s25 = sadd.s32 4294967295, %s1157_s24   ;;  %p923_p0 = scmp.ge.s32.totalorder %s1157_s24, 1  ;;  %s1157_s24 = sphi %s1203_s24, %s17_s24  }
   0x2   : > { %p238_p1 = scmp.lt.s32.totalorder %s1157_s24, 3 }
   0x4   : > { %p239_p2 = pnand %p923_p0, %p238_p1 }
   0x5   : > { %s924_s26 = sshll.u32 (!%p239_p2), %s919_s25, 4  ;;  %vm326_vm0 = vcmask (!%p239_p2), 130048   ;;  %v298_v0 = vld [vmem:[%s1441_s1] sm:$0xff] (!%p239_p2)  ;;  %v1159_v1 = vmov (!%p239_p2), 0   ;;  %v304_v3 = vld [vmem:[%s1442_s2 + $0x10] sm:$0xff] (!%p239_p2)  ;;  %v303_v4 = vld [vmem:[%s1442_s2 + $0x8] sm:$0xff] (!%p239_p2) }
   0x6   : > { %242 = sbr.rel (%p239_p2) target bundleno = 980 (0x3d4), region = 48  ;;  %p271_p3 = scmp.lt.s32.totalorder (!%p239_p2), %s924_s26, 31  ;;  %1028 = vmatprep.mubr.msk.f32.mxu0 (!%p239_p2), %vm326_vm0, %v298_v0  ;;  %1133 = vset.pattern.permute.xlu0 (!%p239_p2), %v1159_v1  ;;  %v302_v2 = vld [vmem:[%s1442_s2] sm:$0xff] (!%p239_p2)  ;;  %v305_v5 = vld [vmem:[%s1442_s2 + $0x18] sm:$0xff] (!%p239_p2)  ;;  %vm1239_vm1 = vmpackc.low (!%p239_p2), %vm326_vm0, %vm326_vm0  ;;  %vm568_vm2 = vcmask (!%p239_p2), 261120   ;;  %vm1161_vm11 = vmmov (!%p239_p2), 0  }
   0x7   : > { %308 = vperm.xlu0 (!%p239_p2), %1133, %v302_v2   ;;  %1134 = vset.pattern.permute.xlu1 (!%p239_p2), %v1159_v1  ;;  %v544_v7 = vld [vmem:[%s1444_s4] sm:$0xff] (!%p239_p2)  ;;  %v545_v13 = vld [vmem:[%s1444_s4 + $0x8] sm:$0xff] (!%p239_p2)  ;;  %v546_v15 = vld [vmem:[%s1444_s4 + $0x10] sm:$0xff] (!%p239_p2) }
   0x8   : > { %318 = vperm.xlu1 (!%p239_p2), %1134, %v304_v3   ;;  %v547_v16 = vld [vmem:[%s1444_s4 + $0x18] sm:$0xff] (!%p239_p2)  ;;  %v735_v19 = vld [vmem:[%s1446_s6] sm:$0xff] (!%p239_p2)  ;;  %v299_v36 = vld [vmem:[%s1441_s1 + $0x8] sm:$0xff] (!%p239_p2) }
   0x9   : > { %v300_v37 = vld [vmem:[%s1441_s1 + $0x10] sm:$0xff] (!%p239_p2)  ;;  %v301_v38 = vld [vmem:[%s1441_s1 + $0x18] sm:$0xff] (!%p239_p2)  ;;  %v540_v39 = vld [vmem:[%s1443_s3] sm:$0xff] (!%p239_p2) }
   0xa   : > { %1042 = vmatprep.mubr.msk.f32.mxu1 (!%p239_p2), %vm568_vm2, %v540_v39 }
   0xb   : > { %313 = vperm.xlu0 (!%p239_p2), %1133, %v303_v4  }
   0xc   : > { %323 = vperm.xlu1 (!%p239_p2), %1134, %v305_v5  }
   0xd   : > { %s1451_s26 = smov (!%p271_p3, %s924_s26), 31 }
   0xe   : > { %s925_s14 = sshll.u32 %s1451_s26, 3 }
   0xf   : > { %s1235_s17 = scalar_lea.vmem %s1440_s0, %s925_s14  ;;  %550 = vperm.xlu0 %1133, %v544_v7   ;;  %s1403_s28 = scalar_lea.vmem %s1447_s7, %s925_s14 }
  0x10   : > { %v282_v8 = vld [vmem:[%s1235_s17] sm:$0xff]  ;;  %v283_v9 = vld [vmem:[%s1235_s17 + $0x8] sm:$0xff]  ;;  %v284_v10 = vld [vmem:[%s1235_s17 + $0x10] sm:$0xff]  ;;  %555 = vperm.xlu1 %1134, %v545_v13  }
  0x11   : > { %v1059_v11 = vpack.c.bf16 %v283_v9, %v282_v8  ;;  %v285_v12 = vld [vmem:[%s1235_s17 + $0x18] sm:$0xff]  ;;  %v286_v17 = vld [vmem:[%s1235_s17 + $0x20] sm:$0xff]  ;;  %v287_v18 = vld [vmem:[%s1235_s17 + $0x28] sm:$0xff] }
  0x12   : > { %v1065_v14 = vpack.c.bf16 %v285_v12, %v284_v10  ;;  %v1071_v20 = vpack.c.bf16 %v287_v18, %v286_v17  ;;  %v288_v21 = vld [vmem:[%s1235_s17 + $0x30] sm:$0xff]  ;;  %v289_v22 = vld [vmem:[%s1235_s17 + $0x38] sm:$0xff]  ;;  %v290_v24 = vld [vmem:[%s1235_s17 + $0x40] sm:$0xff] }
  0x13   : > { %1061 = vmatprep.subr.msk.bf16.mxu0 %vm1239_vm1, %v1059_v11  ;;  %560 = vperm.xlu0 %1133, %v546_v15   ;;  %v1077_v23 = vpack.c.bf16 %v289_v22, %v288_v21  ;;  %v291_v25 = vld [vmem:[%s1235_s17 + $0x48] sm:$0xff]  ;;  %v292_v27 = vld [vmem:[%s1235_s17 + $0x50] sm:$0xff]  ;;  %v293_v28 = vld [vmem:[%s1235_s17 + $0x58] sm:$0xff] }
  0x14   : > { %1064 = vmatpush3.bf16.xpose.msk.msra.mxu0 %vm1239_vm1, %v1059_v11  ;;  %565 = vperm.xlu1 %1134, %v547_v16   ;;  %v1083_v26 = vpack.c.bf16 %v291_v25, %v290_v24  ;;  %v1089_v29 = vpack.c.bf16 %v293_v28, %v292_v27  ;;  %v294_v30 = vld [vmem:[%s1235_s17 + $0x60] sm:$0xff]  ;;  %v295_v31 = vld [vmem:[%s1235_s17 + $0x68] sm:$0xff]  ;;  %v296_v33 = vld [vmem:[%s1235_s17 + $0x70] sm:$0xff] }
  0x15   : > { %1067 = vmatprep.subr.msk.bf16.mxu0 %vm1239_vm1, %v1065_v14  ;;  %v1095_v32 = vpack.c.bf16 %v295_v31, %v294_v30  ;;  %v297_v34 = vld [vmem:[%s1235_s17 + $0x78] sm:$0xff] }
  0x16   : > { %v1101_v35 = vpack.c.bf16 %v297_v34, %v296_v33 }
  0x17   : > { %738 = vperm.xlu0 %1133, %v735_v19  }
  0x1c   : > { %1070 = vmatpush3.bf16.xpose.msk.msra.mxu0 %vm1239_vm1, %v1065_v14 }
  0x1d   : > { %1073 = vmatprep.subr.msk.bf16.mxu0 %vm1239_vm1, %v1071_v20 }
  0x24   : > { %1076 = vmatpush3.bf16.xpose.msk.msra.mxu0 %vm1239_vm1, %v1071_v20 }
  0x25   : > { %1079 = vmatprep.subr.msk.bf16.mxu0 %vm1239_vm1, %v1077_v23 }
  0x2c   : > { %1082 = vmatpush3.bf16.xpose.msk.msra.mxu0 %vm1239_vm1, %v1077_v23 }
  0x2d   : > { %1085 = vmatprep.subr.msk.bf16.mxu0 %vm1239_vm1, %v1083_v26 }
  0x34   : > { %1088 = vmatpush3.bf16.xpose.msk.msra.mxu0 %vm1239_vm1, %v1083_v26 }
  0x35   : > { %1091 = vmatprep.subr.msk.bf16.mxu0 %vm1239_vm1, %v1089_v29 }
  0x3c   : > { %1094 = vmatpush3.bf16.xpose.msk.msra.mxu0 %vm1239_vm1, %v1089_v29 }
  0x3d   : > { %1097 = vmatprep.subr.msk.bf16.mxu0 %vm1239_vm1, %v1095_v32 }
  0x44   : > { %1100 = vmatpush3.bf16.xpose.msk.msra.mxu0 %vm1239_vm1, %v1095_v32 }
  0x45   : > { %1103 = vmatprep.subr.msk.bf16.mxu0 %vm1239_vm1, %v1101_v35 }
  0x4c   : > { %1106 = vmatpush3.bf16.xpose.msk.msra.mxu0 %vm1239_vm1, %v1101_v35 }
  0x53   : > { %1029 = vmatmul.mubr.msk.f32.vlgmr.msra.gmra.mrb[0].mxu0 %vm326_vm0, %v299_v36 }
  0x54   : > { %1031 = vmatprep.mubr.msk.f32.mxu0 %vm326_vm0, %v300_v37 }
  0x57   : > { %1032 = vmatmul.mubr.msk.f32.gmra.mrb[2].mxu0 %vm326_vm0, %v301_v38 }
  0x86   : > { %v309_v40 = vpop.permute.xlu0 %308 }
  0x87   : > { %v319_v41 = vpop.permute.xlu1 %318 }
  0x8a   : > { %v314_v42 = vpop.permute.xlu0 %313 }
  0x8b   : > { %v324_v48 = vpop.permute.xlu1 %323 }
 0x126   : > { %v1030_v43 = vpop.f32.mrb[0].mxu0 }
 0x127   : > { %v1322_v44 = vadd.f32 %v1030_v43, %v314_v42  ;;  %v453_v45 = vpop.f32.mrb[1].mxu0 }
 0x128   : > { %v1324_v46 = vadd.f32 %v453_v45, %v309_v40 }
 0x129   : > { %v473_v47 = vmin.f32 %v1322_v44, 0.0  ;;  %vm533_vm5 = vcmp.gt.f32.partialorder %v1322_v44, 0.0 }
 0x12a   : > { %v472_v49 = vmin.f32 %v1324_v46, 0.0  ;;  %v1033_v50 = vpop.f32.mrb[2].mxu0  ;;  %vm532_vm6 = vcmp.gt.f32.partialorder %v1324_v46, 0.0 }
 0x12b   : > { %v1328_v51 = vadd.f32 %v1033_v50, %v324_v48  ;;  %v463_v52 = vpop.f32.mrb[3].mxu0  ;;  %v478_v53 = vmul.f32 1.442695, %v473_v47  ;;  %v489_v54 = vmul.f32 0.008333334, %v473_v47  ;;  %vm525_vm3 = vcmp.gt.f32.partialorder %v473_v47, -0.25 }
 0x12c   : > { %v1330_v55 = vadd.f32 %v463_v52, %v319_v41  ;;  %v476_v56 = vmul.f32 1.442695, %v472_v49  ;;  %v488_v57 = vmul.f32 0.008333334, %v472_v49  ;;  %vm524_vm4 = vcmp.gt.f32.partialorder %v472_v49, -0.25  ;;  %v541_v50 = vld [vmem:[%s1443_s3 + $0x8] sm:$0xff] }
 0x12d   : > { %v1333_v58 = vmin.f32 %v1328_v51, 0.0  ;;  %v493_v59 = vadd.f32 0.041666668, %v489_v54  ;;  %1135 = vpow2.f32 %v478_v53  ;;  %vm535_vm8 = vcmp.gt.f32.partialorder %v1328_v51, 0.0  ;;  %v542_v52 = vld [vmem:[%s1443_s3 + $0x10] sm:$0xff] }
 0x12e   : > { %v1336_v60 = vmin.f32 %v1330_v55, 0.0  ;;  %v492_v61 = vadd.f32 0.041666668, %v488_v57  ;;  %1137 = vpow2.f32 %v476_v56  ;;  %vm534_vm10 = vcmp.gt.f32.partialorder %v1330_v55, 0.0  ;;  %v551_v56 = vpop.permute.xlu0 %550 }
 0x12f   : > { %v497_v62 = vmul.f32 %v493_v59, %v473_v47  ;;  %v482_v63 = vmul.f32 1.442695, %v1333_v58  ;;  %v491_v0 = vmul.f32 0.008333334, %v1333_v58  ;;  %vm527_vm7 = vcmp.gt.f32.partialorder %v1333_v58, -0.25 }
 0x130   : > { %v496_v1 = vmul.f32 %v492_v61, %v472_v49  ;;  %v480_v2 = vmul.f32 1.442695, %v1336_v60  ;;  %v490_v3 = vmul.f32 0.008333334, %v1336_v60  ;;  %vm526_vm9 = vcmp.gt.f32.partialorder %v1336_v60, -0.25 }
 0x131   : > { %v501_v4 = vadd.f32 0.16666667, %v497_v62  ;;  %v495_v5 = vadd.f32 0.041666668, %v491_v0  ;;  %1139 = vpow2.f32 %v482_v63  ;;  %v1160_v53 = vmov 0.0|0.0  }
 0x132   : > { %v500_v6 = vadd.f32 0.16666667, %v496_v1  ;;  %v494_v7 = vadd.f32 0.041666668, %v490_v3  ;;  %1141 = vpow2.f32 %v480_v2  ;;  %v1162_v54 = vmov 0.0   ;;  %v561_v1 = vpop.permute.xlu0 %560 }
 0x133   : > { %v505_v8 = vmul.f32 %v501_v4, %v473_v47  ;;  %v499_v9 = vmul.f32 %v495_v5, %v1333_v58 }
 0x134   : > { %v504_v10 = vmul.f32 %v500_v6, %v472_v49  ;;  %v498_v11 = vmul.f32 %v494_v7, %v1336_v60 }
 0x135   : > { %v509_v12 = vadd.f32 0.5, %v505_v8  ;;  %v503_v13 = vadd.f32 0.16666667, %v499_v9 }
 0x136   : > { %v508_v14 = vadd.f32 0.5, %v504_v10  ;;  %v502_v15 = vadd.f32 0.16666667, %v498_v11 }
 0x137   : > { %v513_v16 = vmul.f32 %v509_v12, %v473_v47  ;;  %v507_v17 = vmul.f32 %v503_v13, %v1333_v58  ;;  %v1136_v18 = vpop.eup %1135 }
 0x138   : > { %v512_v19 = vmul.f32 %v508_v14, %v472_v49  ;;  %v506_v20 = vmul.f32 %v502_v15, %v1336_v60  ;;  %v1138_v21 = vpop.eup %1137  ;;  %v949_v26 = vadd.f32 -1.0, %v1136_v18 }
 0x139   : > { %v517_v22 = vadd.f32 1.0, %v513_v16  ;;  %v511_v23 = vadd.f32 0.5, %v507_v17  ;;  %v948_v30 = vadd.f32 -1.0, %v1138_v21 }
 0x13a   : > { %v516_v24 = vadd.f32 1.0, %v512_v19  ;;  %v510_v25 = vadd.f32 0.5, %v506_v20 }
 0x13b   : > { %v521_v27 = vmul.f32 %v517_v22, %v473_v47  ;;  %v515_v28 = vmul.f32 %v511_v23, %v1333_v58  ;;  %v1140_v29 = vpop.eup %1139 }
 0x13c   : > { %v520_v31 = vmul.f32 %v516_v24, %v472_v49  ;;  %v514_v32 = vmul.f32 %v510_v25, %v1336_v60  ;;  %v1142_v33 = vpop.eup %1141  ;;  %v951_v40 = vadd.f32 -1.0, %v1140_v29 }
 0x13d   : > { %v529_v34 = vsel %vm525_vm3, %v521_v27, %v949_v26  ;;  %v519_v35 = vadd.f32 1.0, %v515_v28  ;;  %v950_v43 = vadd.f32 -1.0, %v1142_v33 }
 0x13e   : > { %v528_v36 = vsel %vm524_vm4, %v520_v31, %v948_v30  ;;  %v537_v37 = vsel %vm533_vm5, %v1322_v44, %v529_v34  ;;  %v518_v38 = vadd.f32 1.0, %v514_v32  ;;  %vm846_vm5 = vcmask 64512  }
 0x13f   : > { %v536_v39 = vsel %vm532_vm6, %v1324_v46, %v528_v36  ;;  %v523_v41 = vmul.f32 %v519_v35, %v1333_v58 }
 0x140   : > { %v1107_v42 = vpack.c.bf16 %v537_v37, %v536_v39  ;;  %v522_v45 = vmul.f32 %v518_v38, %v1336_v60 }
 0x141   : > { %v531_v47 = vsel %vm527_vm7, %v523_v41, %v951_v40 }
 0x142   : > { %1108 = vmatprep.subr.bf16.mxu1 %v1107_v42  ;;  %v530_v44 = vsel %vm526_vm9, %v522_v45, %v950_v43  ;;  %v539_v46 = vsel %vm535_vm8, %v1328_v51, %v531_v47  ;;  %v543_v51 = vld [vmem:[%s1443_s3 + $0x18] sm:$0xff] }
 0x143   : > { %1110 = vmatpush3.bf16.msra.mxu1 %v1107_v42  ;;  %v538_v48 = vsel %vm534_vm10, %v1330_v55, %v530_v44  ;;  %v556_v55 = vpop.permute.xlu1 %555 }
 0x144   : > { %v1111_v49 = vpack.c.bf16 %v539_v46, %v538_v48 }
 0x146   : > { %1112 = vmatprep.subr.bf16.mxu1 %v1111_v49 }
 0x147   : > { %1114 = vmatpush3.bf16.msra.mxu1 %v1111_v49  ;;  %v566_v62 = vpop.permute.xlu1 %565 }
 0x148   : > { %1115 = vmatprep.subr.bf16.mxu1 %v1160_v53 }
 0x14a   : > { %1043 = vmatmul.mubr.msk.f32.vlgmr.msra.gmra.mrb[0].mxu1 %vm568_vm2, %v541_v50 }
 0x14b   : > { %1045 = vmatprep.mubr.msk.f32.mxu1 %vm568_vm2, %v542_v52 }
 0x14e   : > { %1046 = vmatmul.mubr.msk.f32.gmra.mrb[2].mxu1 %vm568_vm2, %v543_v51 }
 0x14f   : > { %1056 = vmatprep.mubr.msk.f32.mxu1 %vm1161_vm11, %v1162_v54 }
 0x21d   : > { %v1044_v57 = vpop.f32.mrb[0].mxu1 }
 0x21e   : > { %v1373_v58 = vadd.f32 %v1044_v57, %v556_v55  ;;  %v647_v59 = vpop.f32.mrb[1].mxu1 }
 0x21f   : > { %v1375_v60 = vadd.f32 %v647_v59, %v551_v56 }
 0x220   : > { %v667_v61 = vmin.f32 %v1373_v58, 0.0  ;;  %vm727_vm13 = vcmp.gt.f32.partialorder %v1373_v58, 0.0 }
 0x221   : > { %v666_v63 = vmin.f32 %v1375_v60, 0.0  ;;  %v1047_v0 = vpop.f32.mrb[2].mxu1  ;;  %vm726_vm15 = vcmp.gt.f32.partialorder %v1375_v60, 0.0 }
 0x222   : > { %v672_v2 = vmul.f32 1.442695, %v667_v61  ;;  %v683_v3 = vmul.f32 0.008333334, %v667_v61  ;;  %v1379_v4 = vadd.f32 %v1047_v0, %v566_v62  ;;  %v657_v5 = vpop.f32.mrb[3].mxu1  ;;  %vm719_vm12 = vcmp.gt.f32.partialorder %v667_v61, -0.25 }
 0x223   : > { %v670_v6 = vmul.f32 1.442695, %v666_v63  ;;  %v682_v7 = vmul.f32 0.008333334, %v666_v63  ;;  %v1381_v8 = vadd.f32 %v657_v5, %v561_v1  ;;  %vm718_vm14 = vcmp.gt.f32.partialorder %v666_v63, -0.25 }
 0x224   : > { %v687_v9 = vadd.f32 0.041666668, %v683_v3  ;;  %v669_v10 = vmin.f32 %v1379_v4, 0.0  ;;  %1143 = vpow2.f32 %v672_v2  ;;  %vm729_vm1 = vcmp.gt.f32.partialorder %v1379_v4, 0.0  ;;  %v734_v2 = vld [vmem:[%s1445_s5] sm:$0xff]  ;;  %v739_v3 = vpop.permute.xlu0 %738 }
 0x225   : > { %v686_v11 = vadd.f32 0.041666668, %v682_v7  ;;  %v668_v12 = vmin.f32 %v1381_v8, 0.0  ;;  %1145 = vpow2.f32 %v670_v6  ;;  %vm728_vm4 = vcmp.gt.f32.partialorder %v1381_v8, 0.0 }
 0x226   : > { %v691_v13 = vmul.f32 %v687_v9, %v667_v61  ;;  %v676_v14 = vmul.f32 1.442695, %v669_v10  ;;  %v685_v15 = vmul.f32 0.008333334, %v669_v10  ;;  %vm721_vm0 = vcmp.gt.f32.partialorder %v669_v10, -0.25 }
 0x227   : > { %v690_v16 = vmul.f32 %v686_v11, %v666_v63  ;;  %v674_v17 = vmul.f32 1.442695, %v668_v12  ;;  %v684_v18 = vmul.f32 0.008333334, %v668_v12  ;;  %vm720_vm3 = vcmp.gt.f32.partialorder %v668_v12, -0.25 }
 0x228   : > { %v695_v19 = vadd.f32 0.16666667, %v691_v13  ;;  %v689_v20 = vadd.f32 0.041666668, %v685_v15  ;;  %1147 = vpow2.f32 %v676_v14 }
 0x229   : > { %v694_v21 = vadd.f32 0.16666667, %v690_v16  ;;  %v688_v22 = vadd.f32 0.041666668, %v684_v18  ;;  %1149 = vpow2.f32 %v674_v17 }
 0x22a   : > { %v699_v23 = vmul.f32 %v695_v19, %v667_v61  ;;  %v693_v24 = vmul.f32 %v689_v20, %v669_v10 }
 0x22b   : > { %v698_v25 = vmul.f32 %v694_v21, %v666_v63  ;;  %v692_v26 = vmul.f32 %v688_v22, %v668_v12 }
 0x22c   : > { %v703_v27 = vadd.f32 0.5, %v699_v23  ;;  %v697_v28 = vadd.f32 0.16666667, %v693_v24 }
 0x22d   : > { %v702_v29 = vadd.f32 0.5, %v698_v25  ;;  %v696_v30 = vadd.f32 0.16666667, %v692_v26 }
 0x22e   : > { %v707_v31 = vmul.f32 %v703_v27, %v667_v61  ;;  %v701_v32 = vmul.f32 %v697_v28, %v669_v10  ;;  %v1144_v33 = vpop.eup %1143 }
 0x22f   : > { %v706_v34 = vmul.f32 %v702_v29, %v666_v63  ;;  %v700_v35 = vmul.f32 %v696_v30, %v668_v12  ;;  %v1146_v36 = vpop.eup %1145  ;;  %v957_v41 = vadd.f32 -1.0, %v1144_v33 }
 0x230   : > { %v711_v37 = vadd.f32 1.0, %v707_v31  ;;  %v705_v38 = vadd.f32 0.5, %v701_v32  ;;  %v956_v47 = vadd.f32 -1.0, %v1146_v36 }
 0x231   : > { %v710_v39 = vadd.f32 1.0, %v706_v34  ;;  %v704_v40 = vadd.f32 0.5, %v700_v35 }
 0x232   : > { %v715_v42 = vmul.f32 %v711_v37, %v667_v61  ;;  %v709_v43 = vmul.f32 %v705_v38, %v669_v10  ;;  %v1148_v45 = vpop.eup %1147 }
 0x233   : > { %v714_v44 = vmul.f32 %v710_v39, %v666_v63  ;;  %v708_v46 = vmul.f32 %v704_v40, %v668_v12  ;;  %v1150_v48 = vpop.eup %1149  ;;  %v959_v56 = vadd.f32 -1.0, %v1148_v45 }
 0x234   : > { %v723_v49 = vsel %vm719_vm12, %v715_v42, %v957_v41  ;;  %v713_v50 = vadd.f32 1.0, %v709_v43  ;;  %v958_v61 = vadd.f32 -1.0, %v1150_v48 }
 0x235   : > { %v731_v52 = vsel %vm727_vm13, %v1373_v58, %v723_v49  ;;  %v722_v51 = vsel %vm718_vm14, %v714_v44, %v956_v47  ;;  %v712_v54 = vadd.f32 1.0, %v708_v46 }
 0x236   : > { %v730_v55 = vsel %vm726_vm15, %v1375_v60, %v722_v51  ;;  %v717_v57 = vmul.f32 %v713_v50, %v669_v10 }
 0x237   : > { %v1116_v59 = vpack.c.bf16 %v731_v52, %v730_v55  ;;  %v716_v62 = vmul.f32 %v712_v54, %v668_v12 }
 0x238   : > { %v725_v0 = vsel %vm721_vm0, %v717_v57, %v959_v56 }
 0x239   : > { %v733_v63 = vsel %vm729_vm1, %v1379_v4, %v725_v0  ;;  %v724_v58 = vsel %vm720_vm3, %v716_v62, %v958_v61  ;;  %1117 = vmatpush3.bf16.msra.mxu1 %v1116_v59 }
 0x23a   : > { %v732_v1 = vsel %vm728_vm4, %v1381_v8, %v724_v58  ;;  %1118 = vmatprep.subr.bf16.mxu1 %v1160_v53 }
 0x23b   : > { %v1119_v60 = vpack.c.bf16 %v733_v63, %v732_v1 }
 0x23d   : > { %1120 = vmatpush3.bf16.msra.mxu1 %v1119_v60 }
 0x240   : > { %1057 = vmatmul.mubr.msk.f32.vlgmr.msra.gmra.mrb[4].mxu1 %vm568_vm2, %v734_v2 }
 0x313   : > { %v810_v5 = vpop.f32.mrb[4].mxu1 }
 0x314   : > { %v811_v6 = vadd.f32 %v810_v5, %v739_v3  ;;  %v1058_v4 = vpop.f32.mrb[5].mxu1 }
 0x316   : > { %814 = vxpose.xlu1.b32.start.end [1/1] (short) %v811_v6, 128 }
 0x396   : > { %v830_v53 = vpop.trf.xlu1 }
 0x397   : > { %847 = vst.msk [vmem:[%s1403_s28] sm:$0xff] %vm846_vm5, %v830_v53 }
 0x39a   : > { %v831_v7 = vpop.trf.xlu1 }
 0x39b   : > { %848 = vst.msk [vmem:[%s1403_s28 + $0x8] sm:$0xff] %vm846_vm5, %v831_v7 }
 0x39e   : > { %v832_v8 = vpop.trf.xlu1 }
 0x39f   : > { %849 = vst.msk [vmem:[%s1403_s28 + $0x10] sm:$0xff] %vm846_vm5, %v832_v8 }
 0x3a2   : > { %v833_v9 = vpop.trf.xlu1 }
 0x3a3   : > { %850 = vst.msk [vmem:[%s1403_s28 + $0x18] sm:$0xff] %vm846_vm5, %v833_v9 }
 0x3a6   : > { %v834_v10 = vpop.trf.xlu1 }
 0x3a7   : > { %851 = vst.msk [vmem:[%s1403_s28 + $0x20] sm:$0xff] %vm846_vm5, %v834_v10 }
 0x3aa   : > { %v835_v11 = vpop.trf.xlu1 }
 0x3ab   : > { %852 = vst.msk [vmem:[%s1403_s28 + $0x28] sm:$0xff] %vm846_vm5, %v835_v11 }
 0x3ae   : > { %v836_v12 = vpop.trf.xlu1 }
 0x3af   : > { %853 = vst.msk [vmem:[%s1403_s28 + $0x30] sm:$0xff] %vm846_vm5, %v836_v12 }
 0x3b2   : > { %v837_v13 = vpop.trf.xlu1 }
 0x3b3   : > { %854 = vst.msk [vmem:[%s1403_s28 + $0x38] sm:$0xff] %vm846_vm5, %v837_v13 }
 0x3b6   : > { %v838_v14 = vpop.trf.xlu1 }
 0x3b7   : > { %855 = vst.msk [vmem:[%s1403_s28 + $0x40] sm:$0xff] %vm846_vm5, %v838_v14 }
 0x3ba   : > { %v839_v15 = vpop.trf.xlu1 }
 0x3bb   : > { %856 = vst.msk [vmem:[%s1403_s28 + $0x48] sm:$0xff] %vm846_vm5, %v839_v15 }
 0x3be   : > { %v840_v16 = vpop.trf.xlu1 }
 0x3bf   : > { %857 = vst.msk [vmem:[%s1403_s28 + $0x50] sm:$0xff] %vm846_vm5, %v840_v16 }
 0x3c2   : > { %v841_v17 = vpop.trf.xlu1 }
 0x3c3   : > { %858 = vst.msk [vmem:[%s1403_s28 + $0x58] sm:$0xff] %vm846_vm5, %v841_v17 }
 0x3c6   : > { %v842_v18 = vpop.trf.xlu1 }
 0x3c7   : > { %859 = vst.msk [vmem:[%s1403_s28 + $0x60] sm:$0xff] %vm846_vm5, %v842_v18 }
 0x3ca   : > { %v843_v19 = vpop.trf.xlu1 }
 0x3cb   : > { %860 = vst.msk [vmem:[%s1403_s28 + $0x68] sm:$0xff] %vm846_vm5, %v843_v19 }
 0x3ce   : > { %v844_v20 = vpop.trf.xlu1 }
 0x3cf   : > { %861 = vst.msk [vmem:[%s1403_s28 + $0x70] sm:$0xff] %vm846_vm5, %v844_v20 }
 0x3d2   : > { %v845_v21 = vpop.trf.xlu1 }
 0x3d3   : > { %862 = vst.msk [vmem:[%s1403_s28 + $0x78] sm:$0xff] %vm846_vm5, %v845_v21 }
 0x3d4 PF: > { %s17_s24 = sadd.s32 1, %s1157_s24  }
 0x3d5   : > { %p14_p4 = scmp.ge.s32.totalorder %s17_s24, 4  }
 0x3d7   :  { %16 = sbr.rel (!%p14_p4) target bundleno = 1 (0x1), region = 78 }

</bundles_post_ra>
